<compile_context>
chip_gen: v7x
topology: tpu7x:2x2x1
jax: 0.10.0
libtpu: 0.0.40
codegen_flags: <defaults>
</compile_context>

<pallas_src>
from functools import partial

import numpy as np
import jax
import jax.numpy as jnp
from jax.experimental import pallas as pl
from jax.experimental.pallas import tpu as pltpu

EPS = 0.003
H1 = 400
H2 = 300

# Rows per grid step.  128 keeps live intermediates within the vreg file while
# M=128 still fully feeds the MXU's M dimension on every TPU generation.
_MAX_BATCH_TILE = 128
# Batches with at least this many rows are split into >= 2 tiles so the
# parallel grid axis gives the second v7x TensorCore work.
_MIN_SPLIT_ROWS = 16


def _round_up(x, m):
    return ((x + m - 1) // m) * m


def _cdiv(a, b):
    return -(-a // b)


def _pad_to(x, shape):
    pads = [(0, s - d) for d, s in zip(x.shape, shape)]
    return jnp.pad(x, pads)


def _batch_tiling(n):
    """Balanced batch tiling: pick num_tiles first (cap 128 rows/tile, >= 2
    tiles for training-sized batches), then tb = ceil(n/num_tiles) rounded up
    to a sublane (8).  Returns (tb, n_padded, num_tiles)."""
    num_tiles = max(1, _cdiv(n, _MAX_BATCH_TILE))
    if n >= _MIN_SPLIT_ROWS:
        num_tiles = max(num_tiles, 2)
    tb = _round_up(_cdiv(n, num_tiles), 8)
    n_p = num_tiles * tb
    return tb, n_p, num_tiles


# ----------------------------------------------------------------------------- kernel
def actor_kernel(x_ref, w1_ref, b1_ref, w2_ref, b2_ref, w3_ref, b3_ref, o_ref):
    # fc1 + relu (f32 accumulation on the MXU regardless of weight dtype)
    h1 = jnp.dot(x_ref[...], w1_ref[...], preferred_element_type=jnp.float32)
    h1 = jnp.maximum(h1 + b1_ref[...], 0.0)
    # fc2 + relu
    h2 = jnp.dot(h1.astype(w2_ref.dtype), w2_ref[...],
                 preferred_element_type=jnp.float32)
    h2 = jnp.maximum(h2 + b2_ref[...], 0.0)
    # fc3 + tanh
    o = jnp.dot(h2.astype(w3_ref.dtype), w3_ref[...],
                preferred_element_type=jnp.float32)
    o_ref[...] = jnp.tanh(o + b3_ref[...]).astype(o_ref.dtype)


# ----------------------------------------------------------------------------- pallas_call builder
def _pallas_mlp(x_p, w1_p, b1_p, w2_p, b2_p, w3_p, b3_p, tb):
    n_p, s_p = x_p.shape
    h1_p = w2_p.shape[0]
    h2_p = w3_p.shape[0]
    a_p = w3_p.shape[1]
    assert n_p % tb == 0, (n_p, tb)
    grid = (n_p // tb,)

    # Weights/biases use constant index_maps -> VMEM-resident across the grid;
    # only the activation tiles (x, out) move per grid step (double-buffered).
    const = lambda i: (0, 0)
    in_specs = [
        pl.BlockSpec((tb, s_p), lambda i: (i, 0)),
        pl.BlockSpec((s_p, h1_p), const),
        pl.BlockSpec((1, h1_p), const),
        pl.BlockSpec((h1_p, h2_p), const),
        pl.BlockSpec((1, h2_p), const),
        pl.BlockSpec((h2_p, a_p), const),
        pl.BlockSpec((1, a_p), const),
    ]
    out_spec = pl.BlockSpec((tb, a_p), lambda i: (i, 0))

    return pl.pallas_call(
        actor_kernel,
        out_shape=jax.ShapeDtypeStruct((n_p, a_p), jnp.float32),
        grid=grid,
        in_specs=in_specs,
        out_specs=out_spec,
        compiler_params=pltpu.CompilerParams(
            dimension_semantics=("parallel",),
            # Real footprint ~4-5 MiB (weights + double-buffered activation
            # tiles); 16 MiB leaves headroom even on v7x's 64 MiB VMEM.
            vmem_limit_bytes=16 << 20,
        ),
    )(x_p, w1_p, b1_p, w2_p, b2_p, w3_p, b3_p)


# ----------------------------------------------------------------------------- params prep (one time)
def prepare_actor_params(params, dtype=jnp.float32):
    """One-time prep: transpose weights to [in, out], zero-pad to (8,128)-
    tileable shapes, cast weights to the compute dtype (biases stay f32).
    Do this once and reuse the result for every forward call."""
    w1, b1 = params["fc1"]
    w2, b2 = params["fc2"]
    w3, b3 = params["fc3"]

    state_dim = w1.shape[1]
    action_dim = w3.shape[0]

    s_p = _round_up(state_dim, 128)
    h1_p = _round_up(w1.shape[0], 128)
    h2_p = _round_up(w2.shape[0], 128)
    a_p = _round_up(action_dim, 128)

    prepared = {
        "w1": _pad_to(w1.T.astype(dtype), (s_p, h1_p)),
        "b1": _pad_to(b1.astype(jnp.float32).reshape(1, -1), (1, h1_p)),
        "w2": _pad_to(w2.T.astype(dtype), (h1_p, h2_p)),
        "b2": _pad_to(b2.astype(jnp.float32).reshape(1, -1), (1, h2_p)),
        "w3": _pad_to(w3.T.astype(dtype), (h2_p, a_p)),
        "b3": _pad_to(b3.astype(jnp.float32).reshape(1, -1), (1, a_p)),
        "state_dim": state_dim,
        "action_dim": action_dim,
    }
    prepared = {k: (jax.device_put(v) if isinstance(v, jnp.ndarray) else v)
                for k, v in prepared.items()}
    return prepared


# ----------------------------------------------------------------------------- jitted entry points
@partial(jax.jit, static_argnames=("action_dim",))
def _actor_forward_jit(state, w1_p, b1_p, w2_p, b2_p, w3_p, b3_p, *, action_dim):
    n = state.shape[0]
    s_p = w1_p.shape[0]
    tb, n_p, _ = _batch_tiling(n)
    x_p = _pad_to(state.astype(w1_p.dtype), (n_p, s_p))
    out_p = _pallas_mlp(x_p, w1_p, b1_p, w2_p, b2_p, w3_p, b3_p, tb)
    return out_p[:n, :action_dim]


@partial(jax.jit, static_argnames=("tb",))
def _actor_forward_padded_jit(x_p, w1_p, b1_p, w2_p, b2_p, w3_p, b3_p, *, tb):
    return _pallas_mlp(x_p, w1_p, b1_p, w2_p, b2_p, w3_p, b3_p, tb)


def actor_forward(state, prepared):
    """state: [n, state_dim] float32. Returns [n, action_dim] float32.
    Convenience path: pad -> kernel -> slice fused under one jax.jit."""
    return _actor_forward_jit(
        state,
        prepared["w1"], prepared["b1"],
        prepared["w2"], prepared["b2"],
        prepared["w3"], prepared["b3"],
        action_dim=prepared["action_dim"],
    )


def actor_batch_tiling(n):
    """Returns (tb, n_padded) for a batch of n rows; use with the padded path."""
    tb, n_p, _ = _batch_tiling(n)
    return tb, n_p


def actor_forward_padded(x_padded, prepared, tb):
    """Fast path for callers that keep a persistent zero-padded state buffer
    [n_padded, s_p] (n_padded a multiple of tb from actor_batch_tiling):
    skips the per-call pad and slice copies; returns the padded output
    [n_padded, a_p] float32."""
    return _actor_forward_padded_jit(
        x_padded,
        prepared["w1"], prepared["b1"],
        prepared["w2"], prepared["b2"],
        prepared["w3"], prepared["b3"],
        tb=tb,
    )


# ----------------------------------------------------------------------------- init + reference
def init_actor_params(key, state_dim, action_dim):
    """Deterministic init mirroring the PyTorch module:
       fc1/fc2 weights: fanin_init with fanin = size[0] (= out_features — a quirk
       of the reference code, kept intentionally); fc3 weights: uniform(-EPS, EPS);
       biases: default nn.Linear init uniform(-1/sqrt(in_features), 1/sqrt(in_features))."""
    ks = jax.random.split(key, 6)

    def fanin_init(k, size):
        v = 1.0 / np.sqrt(size[0])
        return jax.random.uniform(k, size, jnp.float32, -v, v)

    def bias_init(k, out_f, in_f):
        v = 1.0 / np.sqrt(in_f)
        return jax.random.uniform(k, (out_f,), jnp.float32, -v, v)

    w1 = fanin_init(ks[0], (H1, state_dim))
    b1 = bias_init(ks[1], H1, state_dim)
    w2 = fanin_init(ks[2], (H2, H1))
    b2 = bias_init(ks[3], H2, H1)
    w3 = jax.random.uniform(ks[4], (action_dim, H2), jnp.float32, -EPS, EPS)
    b3 = bias_init(ks[5], action_dim, H2)
    return {"fc1": (w1, b1), "fc2": (w2, b2), "fc3": (w3, b3)}


def actor_reference(state, params):
    """Pure-JAX reference of the PyTorch forward for validation."""
    w1, b1 = params["fc1"]
    w2, b2 = params["fc2"]
    w3, b3 = params["fc3"]
    h = jnp.maximum(state @ w1.T + b1, 0.0)
    h = jnp.maximum(h @ w2.T + b2, 0.0)
    return jnp.tanh(h @ w3.T + b3)


# ----------------------------------------------------------------------------- main
if __name__ == "__main__":
    key = jax.random.PRNGKey(0)
    k_param, k_state1, k_state2 = jax.random.split(key, 3)

    state_dim, action_dim = 3, 1  # Pendulum-v0 sizes
    params = init_actor_params(k_param, state_dim, action_dim)
    prepared = prepare_actor_params(params)  # one-time weight transpose/pad/cast

    # Small inference-style batch (single 8-row tile, grid=(1,)).
    state_small = jax.random.normal(k_state1, (2, state_dim), jnp.float32)
    out_small = jax.block_until_ready(actor_forward(state_small, prepared))
    ref_small = actor_reference(state_small, params)
    np.testing.assert_allclose(np.asarray(out_small), np.asarray(ref_small),
                               rtol=1e-5, atol=1e-5)

    # Training-style batch: balanced tiles (n=300 -> 3 x 104 rows) over the
    # parallel grid axis (both v7x TensorCores participate).
    state_big = jax.random.normal(k_state2, (300, state_dim), jnp.float32)
    out_big = jax.block_until_ready(actor_forward(state_big, prepared))
    ref_big = actor_reference(state_big, params)
    np.testing.assert_allclose(np.asarray(out_big), np.asarray(ref_big),
                               rtol=1e-5, atol=1e-5)

    # Pre-padded fast path: no per-call pad/slice copies around the pallas_call.
    tb, n_p = actor_batch_tiling(state_big.shape[0])
    s_p = prepared["w1"].shape[0]
    x_padded = _pad_to(state_big.astype(prepared["w1"].dtype), (n_p, s_p))
    out_padded = jax.block_until_ready(actor_forward_padded(x_padded, prepared, tb))
    np.testing.assert_allclose(
        np.asarray(out_padded[:state_big.shape[0], :action_dim]),
        np.asarray(ref_big), rtol=1e-5, atol=1e-5)

    # Optional bf16 weight/activation path (halves weight DMA; looser tolerance).
    prepared_bf16 = prepare_actor_params(params, dtype=jnp.bfloat16)
    out_bf16 = jax.block_until_ready(actor_forward(state_big, prepared_bf16))
    np.testing.assert_allclose(np.asarray(out_bf16), np.asarray(ref_big),
                               rtol=5e-2, atol=5e-2)

    print("KERNEL_OK")
</pallas_src>

<mosaic_0001>
module attributes {stable_mosaic.version = 11 : i64} {
  func.func @actor_kernel(%arg0: i32, %arg1: memref<8x128xf32, #tpu.memory_space<vmem>>, %arg2: memref<128x512xf32, #tpu.memory_space<vmem>>, %arg3: memref<1x512xf32, #tpu.memory_space<vmem>>, %arg4: memref<512x384xf32, #tpu.memory_space<vmem>>, %arg5: memref<1x384xf32, #tpu.memory_space<vmem>>, %arg6: memref<384x128xf32, #tpu.memory_space<vmem>>, %arg7: memref<1x128xf32, #tpu.memory_space<vmem>>, %arg8: memref<8x128xf32, #tpu.memory_space<vmem>>) attributes {dimension_semantics = [#tpu.dimension_semantics<parallel>], iteration_bounds = array<i64: 1>, scalar_prefetch = 0 : i64, scratch_operands = 0 : i64, tpu.core_type = #tpu.core_type<tc>, window_params = [{transform_indices = @transform_0, window_bounds = array<i64: 8, 128>}, {pipeline_mode = #tpu.pipeline_mode<synchronous>, transform_indices = @transform_1, window_bounds = array<i64: 128, 512>}, {pipeline_mode = #tpu.pipeline_mode<synchronous>, transform_indices = @transform_2, window_bounds = array<i64: 1, 512>}, {pipeline_mode = #tpu.pipeline_mode<synchronous>, transform_indices = @transform_3, window_bounds = array<i64: 512, 384>}, {pipeline_mode = #tpu.pipeline_mode<synchronous>, transform_indices = @transform_4, window_bounds = array<i64: 1, 384>}, {pipeline_mode = #tpu.pipeline_mode<synchronous>, transform_indices = @transform_5, window_bounds = array<i64: 384, 128>}, {pipeline_mode = #tpu.pipeline_mode<synchronous>, transform_indices = @transform_6, window_bounds = array<i64: 1, 128>}, {transform_indices = @transform_7, window_bounds = array<i64: 8, 128>}]} {
    %c0 = arith.constant 0 : index
    %c0_0 = arith.constant 0 : index
    %0 = vector.load %arg1[%c0, %c0_0] : memref<8x128xf32, #tpu.memory_space<vmem>>, vector<8x128xf32>
    %c0_1 = arith.constant 0 : index
    %c0_2 = arith.constant 0 : index
    %1 = vector.load %arg2[%c0_1, %c0_2] : memref<128x512xf32, #tpu.memory_space<vmem>>, vector<128x512xf32>
    %cst = arith.constant dense<0.000000e+00> : vector<8x512xf32>
    %2 = tpu.matmul %0, %1, %cst {dimension_numbers = #tpu.dot_dimension_numbers<[1], [0], [0], [1], [0, 0, 1, 1], [], []>} : vector<8x128xf32>, vector<128x512xf32>, vector<8x512xf32> -> vector<8x512xf32>
    %c0_3 = arith.constant 0 : index
    %c0_4 = arith.constant 0 : index
    %3 = vector.load %arg3[%c0_3, %c0_4] : memref<1x512xf32, #tpu.memory_space<vmem>>, vector<1x512xf32>
    %4 = vector.broadcast %3 : vector<1x512xf32> to vector<8x512xf32>
    %5 = arith.addf %2, %4 : vector<8x512xf32>
    %cst_5 = arith.constant 0.000000e+00 : f32
    %6 = vector.broadcast %cst_5 : f32 to vector<8x512xf32>
    %7 = arith.maximumf %5, %6 : vector<8x512xf32>
    %c0_6 = arith.constant 0 : index
    %c0_7 = arith.constant 0 : index
    %8 = vector.load %arg4[%c0_6, %c0_7] : memref<512x384xf32, #tpu.memory_space<vmem>>, vector<512x384xf32>
    %cst_8 = arith.constant dense<0.000000e+00> : vector<8x384xf32>
    %9 = tpu.matmul %7, %8, %cst_8 {dimension_numbers = #tpu.dot_dimension_numbers<[1], [0], [0], [1], [0, 0, 1, 1], [], []>} : vector<8x512xf32>, vector<512x384xf32>, vector<8x384xf32> -> vector<8x384xf32>
    %c0_9 = arith.constant 0 : index
    %c0_10 = arith.constant 0 : index
    %10 = vector.load %arg5[%c0_9, %c0_10] : memref<1x384xf32, #tpu.memory_space<vmem>>, vector<1x384xf32>
    %11 = vector.broadcast %10 : vector<1x384xf32> to vector<8x384xf32>
    %12 = arith.addf %9, %11 : vector<8x384xf32>
    %cst_11 = arith.constant 0.000000e+00 : f32
    %13 = vector.broadcast %cst_11 : f32 to vector<8x384xf32>
    %14 = arith.maximumf %12, %13 : vector<8x384xf32>
    %c0_12 = arith.constant 0 : index
    %c0_13 = arith.constant 0 : index
    %15 = vector.load %arg6[%c0_12, %c0_13] : memref<384x128xf32, #tpu.memory_space<vmem>>, vector<384x128xf32>
    %cst_14 = arith.constant dense<0.000000e+00> : vector<8x128xf32>
    %16 = tpu.matmul %14, %15, %cst_14 {dimension_numbers = #tpu.dot_dimension_numbers<[1], [0], [0], [1], [0, 0, 1, 1], [], []>} : vector<8x384xf32>, vector<384x128xf32>, vector<8x128xf32> -> vector<8x128xf32>
    %c0_15 = arith.constant 0 : index
    %c0_16 = arith.constant 0 : index
    %17 = vector.load %arg7[%c0_15, %c0_16] : memref<1x128xf32, #tpu.memory_space<vmem>>, vector<1x128xf32>
    %18 = vector.broadcast %17 : vector<1x128xf32> to vector<8x128xf32>
    %19 = arith.addf %16, %18 : vector<8x128xf32>
    %20 = math.tanh %19 : vector<8x128xf32>
    %c0_17 = arith.constant 0 : index
    %c0_18 = arith.constant 0 : index
    %21 = vector.load %arg8[%c0_17, %c0_18] : memref<8x128xf32, #tpu.memory_space<vmem>>, vector<8x128xf32>
    tpu.vector_store %arg8[%c0_17, %c0_18], %20 {strides = array<i32>} : memref<8x128xf32, #tpu.memory_space<vmem>>, vector<8x128xf32>,
    return
  }
  func.func @transform_0(%arg0: i32) -> (i32, i32) {
    %c0_i32 = arith.constant 0 : i32
    %c0_i32_0 = arith.constant 0 : i32
    return %arg0, %c0_i32 : i32, i32
  }
  func.func @transform_1(%arg0: i32) -> (i32, i32) {
    %c0_i32 = arith.constant 0 : i32
    %c0_i32_0 = arith.constant 0 : i32
    %c0_i32_1 = arith.constant 0 : i32
    return %c0_i32, %c0_i32_0 : i32, i32
  }
  func.func @transform_2(%arg0: i32) -> (i32, i32) {
    %c0_i32 = arith.constant 0 : i32
    %c0_i32_0 = arith.constant 0 : i32
    %c0_i32_1 = arith.constant 0 : i32
    return %c0_i32, %c0_i32_0 : i32, i32
  }
  func.func @transform_3(%arg0: i32) -> (i32, i32) {
    %c0_i32 = arith.constant 0 : i32
    %c0_i32_0 = arith.constant 0 : i32
    %c0_i32_1 = arith.constant 0 : i32
    return %c0_i32, %c0_i32_0 : i32, i32
  }
  func.func @transform_4(%arg0: i32) -> (i32, i32) {
    %c0_i32 = arith.constant 0 : i32
    %c0_i32_0 = arith.constant 0 : i32
    %c0_i32_1 = arith.constant 0 : i32
    return %c0_i32, %c0_i32_0 : i32, i32
  }
  func.func @transform_5(%arg0: i32) -> (i32, i32) {
    %c0_i32 = arith.constant 0 : i32
    %c0_i32_0 = arith.constant 0 : i32
    %c0_i32_1 = arith.constant 0 : i32
    return %c0_i32, %c0_i32_0 : i32, i32
  }
  func.func @transform_6(%arg0: i32) -> (i32, i32) {
    %c0_i32 = arith.constant 0 : i32
    %c0_i32_0 = arith.constant 0 : i32
    %c0_i32_1 = arith.constant 0 : i32
    return %c0_i32, %c0_i32_0 : i32, i32
  }
  func.func @transform_7(%arg0: i32) -> (i32, i32) {
    %c0_i32 = arith.constant 0 : i32
    %c0_i32_0 = arith.constant 0 : i32
    return %arg0, %c0_i32 : i32, i32
  }
}

</mosaic_0001>

<bundles_post_ra>
// kernel: _actor_forward_jit.1
= control target key start
LH: loop header
LB: loop body
LE: loop exit
PB: predicated region body
PF: predicated region fallthrough
CT: control target
= control target key end

     0   :  { %12 = vsyncpa [#allocation3], 0  ;;  %s1695_s0 = inlined_call_operand.vmem [shape: f32[8,128], index: 0, kind: input, shape index: {}]   ;;  %s1696_s1 = inlined_call_operand.hbm [shape: f32[128,512], index: 1, kind: input, shape index: {}]   ;;  %s1697_s2 = inlined_call_operand.vmem [shape: f32[1,512], index: 2, kind: input, shape index: {}]   ;;  %s1698_s3 = inlined_call_operand.hbm [shape: f32[512,384], index: 3, kind: input, shape index: {}]   ;;  %s1699_s4 = inlined_call_operand.vmem [shape: f32[1,384], index: 4, kind: input, shape index: {}]   ;;  %s1700_s5 = inlined_call_operand.hbm [shape: f32[384,128], index: 5, kind: input, shape index: {}]   ;;  %s1701_s6 = inlined_call_operand.vmem [shape: f32[1,128], index: 6, kind: input, shape index: {}]   ;;  %s1702_s7 = inlined_call_operand.vmem [shape: f32[8,128], index: 7, kind: output, shape index: {}]  }
   0x1   :  { %13 = vsyncpa [#allocation5], 0  ;;  %s1555_s24 = smov [#allocation4]   ;;  %s1485_s28 = scalar_lea.hbm %s1698_s3, 24576 }
   0x2   :  { %s35_s25 = sshll.u32 %s1555_s24, 4  ;;  %p1486_p0 = scmp.ne.s32.totalorder %s1698_s3, %s1485_s28  ;;  %s36_s25 = int_to_ptr.vmem [resolvable:$true] %s35_s25 }
   0x3   :  { %p1489_p1 = scmp.lt.u32.totalorder %s1485_s28, %s1698_s3 }
   0x5   :  { %p1491_p2 = pnand %p1489_p1, %p1486_p0 }
   0x7   :  { %1494 = shalt.err (!%p1491_p2)
}
   0x8   :  { %s1495_s10 = scalar_lea.vmem %s36_s25, 24576  ;;  %p1500_p4 = scmp.lt.s32.totalorder %s36_s25, %s36_s25 }
   0x9   :  { %p1496_p3 = scmp.ne.s32.totalorder %s36_s25, %s1495_s10  ;;  %p1501_p5 = scmp.lt.s32.totalorder %s1495_s10, %s1495_s10 }
   0xb   :  { %p1502_p6 = por %p1501_p5, %p1500_p4 }
   0xd   :  { %p1503_p7 = pnand %p1502_p6, %p1496_p3 }
   0xf   :  { %1506 = shalt.err (!%p1503_p7)
}
  0x10   :  { %s1556_s11 = smov 384   ;;  %s1557_s12 = smov 24  }
  0x11   :  { %41 = dma.hbm_to_vmem [thread:$0]  %s1698_s3, 24576, %s36_s25, [#allocation5], %s1556_s11, %s1556_s11, %s1557_s12  }
  0x12   :  { %s1558_s15 = smov [#allocation2]   ;;  %s1507_s19 = scalar_lea.hbm %s1696_s1, 8192 }
  0x13   :  { %s21_s16 = sshll.u32 %s1558_s15, 4  ;;  %p1508_p8 = scmp.ne.s32.totalorder %s1696_s1, %s1507_s19  ;;  %s22_s16 = int_to_ptr.vmem [resolvable:$true] %s21_s16 }
  0x14   :  { %p1511_p9 = scmp.lt.u32.totalorder %s1507_s19, %s1696_s1 }
  0x16   :  { %p1513_p10 = pnand %p1511_p9, %p1508_p8 }
  0x18   :  { %1516 = shalt.err (!%p1513_p10)
}
  0x19   :  { %s1517_s24 = scalar_lea.vmem %s22_s16, 8192  ;;  %p1522_p12 = scmp.lt.s32.totalorder %s22_s16, %s22_s16 }
  0x1a   :  { %p1518_p11 = scmp.ne.s32.totalorder %s22_s16, %s1517_s24  ;;  %p1523_p13 = scmp.lt.s32.totalorder %s1517_s24, %s1517_s24 }
  0x1c   :  { %p1524_p0 = por %p1523_p13, %p1522_p12 }
  0x1e   :  { %p1525_p1 = pnand %p1524_p0, %p1518_p11 }
  0x20   :  { %1528 = shalt.err (!%p1525_p1)
}
  0x21   :  { %s1559_s3 = smov 512   ;;  %s1560_s25 = smov 32  }
  0x22   :  { %27 = dma.hbm_to_vmem [thread:$0]  %s1696_s1, 8192, %s22_s16, [#allocation3], %s1559_s3, %s1559_s3, %s1560_s25  }
  0x23   :  { %s1561_s28 = smov [#allocation6]   ;;  %s1529_s9 = scalar_lea.hbm %s1700_s5, 6144 }
  0x24   :  { %s49_s29 = sshll.u32 %s1561_s28, 4  ;;  %p1530_p2 = scmp.ne.s32.totalorder %s1700_s5, %s1529_s9  ;;  %s50_s29 = int_to_ptr.vmem [resolvable:$true] %s49_s29 }
  0x25   :  { %p1533_p3 = scmp.lt.u32.totalorder %s1529_s9, %s1700_s5 }
  0x27   :  { %p1535_p4 = pnand %p1533_p3, %p1530_p2 }
  0x29   :  { %1538 = shalt.err (!%p1535_p4)
}
  0x2a   :  { %s1539_s14 = scalar_lea.vmem %s50_s29, 6144  ;;  %p1544_p6 = scmp.lt.s32.totalorder %s50_s29, %s50_s29 }
  0x2b   :  { %p1540_p5 = scmp.ne.s32.totalorder %s50_s29, %s1539_s14  ;;  %p1545_p7 = scmp.lt.s32.totalorder %s1539_s14, %s1539_s14 }
  0x2d   :  { %p1546_p8 = por %p1545_p7, %p1544_p6 }
  0x2f   :  { %p1547_p9 = pnand %p1546_p8, %p1540_p5 }
  0x31   :  { %1550 = shalt.err (!%p1547_p9)
}
  0x32   :  { %s1562_s1 = smov 128   ;;  %s1563_s15 = smov 8  }
  0x33   :  { %55 = dma.hbm_to_vmem [thread:$0]  %s1700_s5, 6144, %s50_s29, [#allocation5], %s1562_s1, %s1562_s1, %s1563_s15  }
  0x34   :  { %1551 = dma.done.wait [#allocation3], 8192  }
  0x35   :  { %1552 = vsyncadd [#allocation3], 4294959104 }
  0x36   :  { %1553 = dma.done.wait [#allocation5], 30720  }
  0x37   :  { %1554 = vsyncadd [#allocation5], 4294936576  ;;  %v1564_v0 = vmov 0.0   ;;  %v69_v1 = vld [vmem:[#allocation2 + $0x8] sm:$0xff]  ;;  %v68_v3 = vld [vmem:[#allocation2] sm:$0xff]  ;;  %vm1566_vm0 = vmmov 0  }
  0x38   :  { %218 = vmatprep.mubr.f32.mxu0 %v1564_v0  ;;  %289 = vmatprep.mubr.f32.mxu1 %v1564_v0  ;;  %v73_v2 = vld [vmem:[#allocation2 + $0x28] sm:$0xff]  ;;  %v72_v5 = vld [vmem:[#allocation2 + $0x20] sm:$0xff]  ;;  %v71_v26 = vld [vmem:[#allocation2 + $0x18] sm:$0xff] }
  0x39   :  { %v1155_v4 = vpack.c.bf16 %v73_v2, %v69_v1  ;;  %v77_v6 = vld [vmem:[#allocation2 + $0x48] sm:$0xff]  ;;  %v1157_v8 = vpack.c.bf16 %v72_v5, %v68_v3  ;;  %v76_v10 = vld [vmem:[#allocation2 + $0x40] sm:$0xff]  ;;  %v75_v29 = vld [vmem:[#allocation2 + $0x38] sm:$0xff] }
  0x3a   :  { %v81_v7 = vld [vmem:[#allocation2 + $0x68] sm:$0xff]  ;;  %v80_v11 = vld [vmem:[#allocation2 + $0x60] sm:$0xff]  ;;  %v70_v30 = vld [vmem:[#allocation2 + $0x10] sm:$0xff]  ;;  %v1187_v32 = vpack.c.bf16 %v75_v29, %v71_v26 }
  0x3b   :  { %v1159_v9 = vpack.c.bf16 %v81_v7, %v77_v6  ;;  %v85_v12 = vld [vmem:[#allocation2 + $0x88] sm:$0xff]  ;;  %1156 = vmatprep.subr.bf16.mxu0 %v1155_v4  ;;  %v1161_v14 = vpack.c.bf16 %v80_v11, %v76_v10  ;;  %v84_v16 = vld [vmem:[#allocation2 + $0x80] sm:$0xff]  ;;  %v74_v33 = vld [vmem:[#allocation2 + $0x30] sm:$0xff] }
  0x3c   :  { %v89_v13 = vld [vmem:[#allocation2 + $0xa8] sm:$0xff]  ;;  %1158 = vmatpush1.bf16.msra.mxu0 %v1157_v8  ;;  %v88_v17 = vld [vmem:[#allocation2 + $0xa0] sm:$0xff]  ;;  %v79_v34 = vld [vmem:[#allocation2 + $0x58] sm:$0xff]  ;;  %v1189_v37 = vpack.c.bf16 %v74_v33, %v70_v30  ;;  %1188 = vmatprep.subr.bf16.mxu1 %v1187_v32 }
  0x3d   :  { %1160 = vmatprep.subr.bf16.mxu0 %v1159_v9  ;;  %v1163_v15 = vpack.c.bf16 %v89_v13, %v85_v12  ;;  %v93_v18 = vld [vmem:[#allocation2 + $0xc8] sm:$0xff]  ;;  %v1165_v20 = vpack.c.bf16 %v88_v17, %v84_v16  ;;  %v92_v22 = vld [vmem:[#allocation2 + $0xc0] sm:$0xff]  ;;  %v83_v35 = vld [vmem:[#allocation2 + $0x78] sm:$0xff] }
  0x3e   :  { %v97_v19 = vld [vmem:[#allocation2 + $0xe8] sm:$0xff]  ;;  %v96_v23 = vld [vmem:[#allocation2 + $0xe0] sm:$0xff]  ;;  %v1191_v38 = vpack.c.bf16 %v83_v35, %v79_v34  ;;  %v78_v39 = vld [vmem:[#allocation2 + $0x50] sm:$0xff]  ;;  %1190 = vmatpush1.bf16.msra.mxu1 %v1189_v37 }
  0x3f   :  { %v1167_v21 = vpack.c.bf16 %v97_v19, %v93_v18  ;;  %v101_v24 = vld [vmem:[#allocation2 + $0x108] sm:$0xff]  ;;  %v100_v27 = vld [vmem:[#allocation2 + $0x100] sm:$0xff]  ;;  %v1169_v31 = vpack.c.bf16 %v96_v23, %v92_v22  ;;  %v82_v40 = vld [vmem:[#allocation2 + $0x70] sm:$0xff] }
  0x40   :  { %1162 = vmatpush1.bf16.msra.mxu0 %v1161_v14  ;;  %v105_v25 = vld [vmem:[#allocation2 + $0x128] sm:$0xff]  ;;  %v104_v28 = vld [vmem:[#allocation2 + $0x120] sm:$0xff]  ;;  %v87_v41 = vld [vmem:[#allocation2 + $0x98] sm:$0xff]  ;;  %v1193_v45 = vpack.c.bf16 %v82_v40, %v78_v39  ;;  %1192 = vmatprep.subr.bf16.mxu1 %v1191_v38 }
  0x41   :  { %1164 = vmatprep.subr.bf16.mxu0 %v1163_v15  ;;  %v1171_v36 = vpack.c.bf16 %v105_v25, %v101_v24  ;;  %v109_v42 = vld [vmem:[#allocation2 + $0x148] sm:$0xff]  ;;  %v91_v44 = vld [vmem:[#allocation2 + $0xb8] sm:$0xff]  ;;  %v1173_v46 = vpack.c.bf16 %v104_v28, %v100_v27  ;;  %v108_v47 = vld [vmem:[#allocation2 + $0x140] sm:$0xff] }
  0x42   :  { %v113_v43 = vld [vmem:[#allocation2 + $0x168] sm:$0xff]  ;;  %v1195_v48 = vpack.c.bf16 %v91_v44, %v87_v41  ;;  %v86_v49 = vld [vmem:[#allocation2 + $0x90] sm:$0xff]  ;;  %v112_v52 = vld [vmem:[#allocation2 + $0x160] sm:$0xff]  ;;  %1194 = vmatpush1.bf16.msra.mxu1 %v1193_v45 }
  0x43   :  { %v90_v50 = vld [vmem:[#allocation2 + $0xb0] sm:$0xff]  ;;  %v1175_v51 = vpack.c.bf16 %v113_v43, %v109_v42  ;;  %v95_v53 = vld [vmem:[#allocation2 + $0xd8] sm:$0xff]  ;;  %v117_v55 = vld [vmem:[#allocation2 + $0x188] sm:$0xff]  ;;  %v1177_v58 = vpack.c.bf16 %v112_v52, %v108_v47 }
  0x44   :  { %1166 = vmatpush1.bf16.msra.mxu0 %v1165_v20  ;;  %v99_v54 = vld [vmem:[#allocation2 + $0xf8] sm:$0xff]  ;;  %v121_v56 = vld [vmem:[#allocation2 + $0x1a8] sm:$0xff]  ;;  %v1197_v57 = vpack.c.bf16 %v90_v50, %v86_v49  ;;  %v116_v59 = vld [vmem:[#allocation2 + $0x180] sm:$0xff]  ;;  %1196 = vmatprep.subr.bf16.mxu1 %v1195_v48 }
  0x45   :  { %1168 = vmatprep.subr.bf16.mxu0 %v1167_v21  ;;  %v1199_v60 = vpack.c.bf16 %v99_v54, %v95_v53  ;;  %v94_v61 = vld [vmem:[#allocation2 + $0xd0] sm:$0xff]  ;;  %v1179_v63 = vpack.c.bf16 %v121_v56, %v117_v55  ;;  %v120_v1 = vld [vmem:[#allocation2 + $0x1a0] sm:$0xff]  ;;  %v103_v2 = vld [vmem:[#allocation2 + $0x118] sm:$0xff] }
  0x46   :  { %v98_v62 = vld [vmem:[#allocation2 + $0xf0] sm:$0xff]  ;;  %v107_v3 = vld [vmem:[#allocation2 + $0x138] sm:$0xff]  ;;  %v125_v4 = vld [vmem:[#allocation2 + $0x1c8] sm:$0xff]  ;;  %1198 = vmatpush1.bf16.msra.mxu1 %v1197_v57  ;;  %v1181_v7 = vpack.c.bf16 %v120_v1, %v116_v59 }
  0x47   :  { %v129_v5 = vld [vmem:[#allocation2 + $0x1e8] sm:$0xff]  ;;  %v1201_v6 = vpack.c.bf16 %v98_v62, %v94_v61  ;;  %v124_v8 = vld [vmem:[#allocation2 + $0x1c0] sm:$0xff]  ;;  %1200 = vmatprep.subr.bf16.mxu1 %v1199_v60  ;;  %v1203_v9 = vpack.c.bf16 %v107_v3, %v103_v2  ;;  %v102_v10 = vld [vmem:[#allocation2 + $0x110] sm:$0xff] }
  0x48   :  { %1170 = vmatpush1.bf16.msra.mxu0 %v1169_v31  ;;  %v106_v11 = vld [vmem:[#allocation2 + $0x130] sm:$0xff]  ;;  %v1183_v12 = vpack.c.bf16 %v129_v5, %v125_v4  ;;  %v128_v13 = vld [vmem:[#allocation2 + $0x1e0] sm:$0xff]  ;;  %v111_v14 = vld [vmem:[#allocation2 + $0x158] sm:$0xff] }
  0x49   :  { %1172 = vmatprep.subr.bf16.mxu0 %v1171_v36  ;;  %v115_v15 = vld [vmem:[#allocation2 + $0x178] sm:$0xff]  ;;  %v301_v16 = vld [vmem:[#allocation4 + $0x8] sm:$0xff]  ;;  %v304_v17 = vld [vmem:[#allocation4 + $0x20] sm:$0xff]  ;;  %v1205_v18 = vpack.c.bf16 %v106_v11, %v102_v10  ;;  %v1185_v19 = vpack.c.bf16 %v128_v13, %v124_v8 }
  0x4a   :  { %1202 = vmatpush1.bf16.msra.mxu1 %v1201_v6  ;;  %v1207_v20 = vpack.c.bf16 %v115_v15, %v111_v14  ;;  %v110_v21 = vld [vmem:[#allocation2 + $0x150] sm:$0xff]  ;;  %v119_v23 = vld [vmem:[#allocation2 + $0x198] sm:$0xff]  ;;  %v1219_v25 = vpack.c.bf16 %v304_v17, %v301_v16  ;;  %v300_v26 = vld [vmem:[#allocation4] sm:$0xff] }
  0x4b   :  { %1204 = vmatprep.subr.bf16.mxu1 %v1203_v9  ;;  %v114_v22 = vld [vmem:[#allocation2 + $0x170] sm:$0xff]  ;;  %v123_v24 = vld [vmem:[#allocation2 + $0x1b8] sm:$0xff]  ;;  %v1648_v30 = vld [vmem:[%s1695_s0] sm:$0xff] }
  0x4c   :  { %1174 = vmatpush1.bf16.msra.mxu0 %v1173_v46  ;;  %v303_v27 = vld [vmem:[#allocation4 + $0x18] sm:$0xff]  ;;  %v310_v29 = vld [vmem:[#allocation4 + $0x50] sm:$0xff]  ;;  %v1209_v31 = vpack.c.bf16 %v114_v22, %v110_v21  ;;  %v1211_v32 = vpack.c.bf16 %v123_v24, %v119_v23  ;;  %v309_v40 = vld [vmem:[#allocation4 + $0x48] sm:$0xff] }
  0x4d   :  { %1176 = vmatprep.subr.bf16.mxu0 %v1175_v51  ;;  %v307_v28 = vld [vmem:[#allocation4 + $0x38] sm:$0xff]  ;;  %v118_v33 = vld [vmem:[#allocation2 + $0x190] sm:$0xff]  ;;  %v1221_v36 = vpack.c.bf16 %v303_v27, %v300_v26  ;;  %v313_v41 = vld [vmem:[#allocation4 + $0x68] sm:$0xff] }
  0x4e   :  { %1206 = vmatpush1.bf16.msra.mxu1 %v1205_v18  ;;  %v122_v34 = vld [vmem:[#allocation2 + $0x1b0] sm:$0xff]  ;;  %v127_v35 = vld [vmem:[#allocation2 + $0x1d8] sm:$0xff]  ;;  %v1223_v38 = vpack.c.bf16 %v310_v29, %v307_v28  ;;  %v316_v42 = vld [vmem:[#allocation4 + $0x80] sm:$0xff] }
  0x4f   :  { %1208 = vmatprep.subr.bf16.mxu1 %v1207_v20  ;;  %v131_v37 = vld [vmem:[#allocation2 + $0x1f8] sm:$0xff]  ;;  %v306_v39 = vld [vmem:[#allocation4 + $0x30] sm:$0xff]  ;;  %v1213_v43 = vpack.c.bf16 %v122_v34, %v118_v33  ;;  %v312_v48 = vld [vmem:[#allocation4 + $0x60] sm:$0xff]  ;;  %v1227_v49 = vpack.c.bf16 %v316_v42, %v313_v41 }
  0x50   :  { %1178 = vmatpush1.bf16.msra.mxu0 %v1177_v58  ;;  %v1215_v44 = vpack.c.bf16 %v131_v37, %v127_v35  ;;  %v126_v45 = vld [vmem:[#allocation2 + $0x1d0] sm:$0xff]  ;;  %v1225_v47 = vpack.c.bf16 %v309_v40, %v306_v39  ;;  %v315_v50 = vld [vmem:[#allocation4 + $0x78] sm:$0xff]  ;;  %v353_v52 = vld [vmem:[#allocation4 + $0x1a8] sm:$0xff] }
  0x51   :  { %1180 = vmatprep.subr.bf16.mxu0 %v1179_v63  ;;  %v130_v46 = vld [vmem:[#allocation2 + $0x1f0] sm:$0xff]  ;;  %v319_v53 = vld [vmem:[#allocation4 + $0x98] sm:$0xff]  ;;  %v1229_v56 = vpack.c.bf16 %v315_v50, %v312_v48  ;;  %v305_v60 = vld [vmem:[#allocation4 + $0x28] sm:$0xff] }
  0x52   :  { %1210 = vmatpush1.bf16.msra.mxu1 %v1209_v31  ;;  %v350_v51 = vld [vmem:[#allocation4 + $0x190] sm:$0xff]  ;;  %v1217_v55 = vpack.c.bf16 %v130_v46, %v126_v45  ;;  %v321_v62 = vld [vmem:[#allocation4 + $0xa8] sm:$0xff]  ;;  %v356_v63 = vld [vmem:[#allocation4 + $0x1c0] sm:$0xff] }
  0x53   :  { %1212 = vmatprep.subr.bf16.mxu1 %v1211_v32  ;;  %v322_v54 = vld [vmem:[#allocation4 + $0xb0] sm:$0xff]  ;;  %v1347_v58 = vpack.c.bf16 %v353_v52, %v350_v51  ;;  %v359_v1 = vld [vmem:[#allocation4 + $0x1d8] sm:$0xff]  ;;  %v325_v2 = vld [vmem:[#allocation4 + $0xc8] sm:$0xff] }
  0x54   :  { %1182 = vmatpush1.bf16.msra.mxu0 %v1181_v7  ;;  %v318_v57 = vld [vmem:[#allocation4 + $0x90] sm:$0xff]  ;;  %v1231_v61 = vpack.c.bf16 %v322_v54, %v319_v53  ;;  %v328_v3 = vld [vmem:[#allocation4 + $0xe0] sm:$0xff]  ;;  %v1351_v7 = vpack.c.bf16 %v359_v1, %v356_v63  ;;  %v311_v9 = vld [vmem:[#allocation4 + $0x58] sm:$0xff] }
  0x55   :  { %1184 = vmatprep.subr.bf16.mxu0 %v1183_v12  ;;  %v302_v59 = vld [vmem:[#allocation4 + $0x10] sm:$0xff]  ;;  %v1233_v5 = vpack.c.bf16 %v321_v62, %v318_v57  ;;  %v324_v6 = vld [vmem:[#allocation4 + $0xc0] sm:$0xff]  ;;  %v1235_v10 = vpack.c.bf16 %v328_v3, %v325_v2  ;;  %v327_v11 = vld [vmem:[#allocation4 + $0xd8] sm:$0xff] }
  0x56   :  { %1214 = vmatpush1.bf16.msra.mxu1 %v1213_v43  ;;  %v1349_v4 = vpack.c.bf16 %v305_v60, %v302_v59  ;;  %v308_v8 = vld [vmem:[#allocation4 + $0x40] sm:$0xff]  ;;  %v362_v12 = vld [vmem:[#allocation4 + $0x1f0] sm:$0xff]  ;;  %v365_v13 = vld [vmem:[#allocation4 + $0x208] sm:$0xff]  ;;  %v1237_v17 = vpack.c.bf16 %v327_v11, %v324_v6 }
  0x57   :  { %1216 = vmatprep.subr.bf16.mxu1 %v1215_v44  ;;  %v331_v14 = vld [vmem:[#allocation4 + $0xf8] sm:$0xff]  ;;  %v334_v15 = vld [vmem:[#allocation4 + $0x110] sm:$0xff]  ;;  %v1353_v16 = vpack.c.bf16 %v311_v9, %v308_v8  ;;  %v317_v21 = vld [vmem:[#allocation4 + $0x88] sm:$0xff] }
  0x58   :  { %1186 = vmatpush1.bf16.msra.mxu0 %v1185_v19  ;;  %v330_v18 = vld [vmem:[#allocation4 + $0xf0] sm:$0xff]  ;;  %v1355_v19 = vpack.c.bf16 %v365_v13, %v362_v12  ;;  %v1239_v22 = vpack.c.bf16 %v334_v15, %v331_v14  ;;  %v333_v23 = vld [vmem:[#allocation4 + $0x108] sm:$0xff]  ;;  %v368_v24 = vld [vmem:[#allocation4 + $0x220] sm:$0xff] }
  0x59   :  { %1220 = vmatprep.subr.bf16.mxu0 %v1219_v25  ;;  %v314_v20 = vld [vmem:[#allocation4 + $0x70] sm:$0xff]  ;;  %v371_v25 = vld [vmem:[#allocation4 + $0x238] sm:$0xff]  ;;  %v337_v26 = vld [vmem:[#allocation4 + $0x128] sm:$0xff]  ;;  %v1241_v29 = vpack.c.bf16 %v333_v23, %v330_v18 }
  0x5a   :  { %1218 = vmatpush1.bf16.msra.mxu1 %v1217_v55  ;;  %v340_v27 = vld [vmem:[#allocation4 + $0x140] sm:$0xff]  ;;  %v1357_v28 = vpack.c.bf16 %v317_v21, %v314_v20  ;;  %v1359_v31 = vpack.c.bf16 %v371_v25, %v368_v24  ;;  %v323_v33 = vld [vmem:[#allocation4 + $0xb8] sm:$0xff]  ;;  %v377_v37 = vld [vmem:[#allocation4 + $0x268] sm:$0xff] }
  0x5b   :  { %219 = vmatmul.mubr.f32.vlgmr.msra.gmra.mrb[0].mxu0 %v1648_v30  ;;  %1348 = vmatprep.subr.bf16.mxu1 %v1347_v58  ;;  %v320_v32 = vld [vmem:[#allocation4 + $0xa0] sm:$0xff]  ;;  %v1243_v34 = vpack.c.bf16 %v340_v27, %v337_v26  ;;  %v339_v35 = vld [vmem:[#allocation4 + $0x138] sm:$0xff]  ;;  %v346_v39 = vld [vmem:[#allocation4 + $0x170] sm:$0xff] }
  0x5c   :  { %1222 = vmatpush1.bf16.msra.mxu0 %v1221_v36  ;;  %v374_v36 = vld [vmem:[#allocation4 + $0x250] sm:$0xff]  ;;  %v1361_v40 = vpack.c.bf16 %v323_v33, %v320_v32  ;;  %v329_v45 = vld [vmem:[#allocation4 + $0xe8] sm:$0xff]  ;;  %v380_v48 = vld [vmem:[#allocation4 + $0x280] sm:$0xff] }
  0x5d   :  { %1224 = vmatprep.subr.bf16.mxu0 %v1223_v38  ;;  %290 = vmatmul.mubr.f32.vlgmr.msra.gmra.mrb[0].mxu1 %v1648_v30  ;;  %v336_v30 = vld [vmem:[#allocation4 + $0x120] sm:$0xff]  ;;  %v343_v38 = vld [vmem:[#allocation4 + $0x158] sm:$0xff]  ;;  %v342_v42 = vld [vmem:[#allocation4 + $0x150] sm:$0xff]  ;;  %v1363_v43 = vpack.c.bf16 %v377_v37, %v374_v36 }
  0x5e   :  { %1350 = vmatpush3.bf16.msra.mxu1 %v1349_v4  ;;  %v1245_v41 = vpack.c.bf16 %v339_v35, %v336_v30  ;;  %v326_v44 = vld [vmem:[#allocation4 + $0xd0] sm:$0xff]  ;;  %v1247_v46 = vpack.c.bf16 %v346_v39, %v343_v38  ;;  %v349_v50 = vld [vmem:[#allocation4 + $0x188] sm:$0xff]  ;;  %v352_v51 = vld [vmem:[#allocation4 + $0x1a0] sm:$0xff] }
  0x5f   :  { %1352 = vmatprep.subr.bf16.mxu1 %v1351_v7  ;;  %v1365_v52 = vpack.c.bf16 %v329_v45, %v326_v44  ;;  %v348_v54 = vld [vmem:[#allocation4 + $0x180] sm:$0xff]  ;;  %v335_v57 = vld [vmem:[#allocation4 + $0x118] sm:$0xff]  ;;  %v1251_v58 = vpack.c.bf16 %v352_v51, %v349_v50  ;;  %v386_v60 = vld [vmem:[#allocation4 + $0x2b0] sm:$0xff] }
  0x60   :  { %1226 = vmatpush1.bf16.msra.mxu0 %v1225_v47  ;;  %v345_v47 = vld [vmem:[#allocation4 + $0x168] sm:$0xff]  ;;  %v351_v59 = vld [vmem:[#allocation4 + $0x198] sm:$0xff]  ;;  %v358_v63 = vld [vmem:[#allocation4 + $0x1d0] sm:$0xff] }
  0x61   :  { %1228 = vmatprep.subr.bf16.mxu0 %v1227_v49  ;;  %v383_v49 = vld [vmem:[#allocation4 + $0x298] sm:$0xff]  ;;  %v1249_v53 = vpack.c.bf16 %v345_v47, %v342_v42  ;;  %v1253_v2 = vpack.c.bf16 %v351_v59, %v348_v54  ;;  %v338_v4 = vld [vmem:[#allocation4 + $0x130] sm:$0xff]  ;;  %v357_v8 = vld [vmem:[#allocation4 + $0x1c8] sm:$0xff]  ;;  %v134_v59 = vlaneseq }
  0x62   :  { %1354 = vmatpush3.bf16.msra.mxu1 %v1353_v16  ;;  %v1367_v55 = vpack.c.bf16 %v383_v49, %v380_v48  ;;  %v355_v62 = vld [vmem:[#allocation4 + $0x1b8] sm:$0xff]  ;;  %v354_v7 = vld [vmem:[#allocation4 + $0x1b0] sm:$0xff]  ;;  %v361_v9 = vld [vmem:[#allocation4 + $0x1e8] sm:$0xff] }
  0x63   :  { %1356 = vmatprep.subr.bf16.mxu1 %v1355_v19  ;;  %v1255_v6 = vpack.c.bf16 %v358_v63, %v355_v62  ;;  %v1257_v12 = vpack.c.bf16 %v357_v8, %v354_v7  ;;  %v360_v14 = vld [vmem:[#allocation4 + $0x1e0] sm:$0xff]  ;;  %v363_v15 = vld [vmem:[#allocation4 + $0x1f8] sm:$0xff]  ;;  %v366_v20 = vld [vmem:[#allocation4 + $0x210] sm:$0xff] }
  0x64   :  { %1230 = vmatpush1.bf16.msra.mxu0 %v1229_v56  ;;  %v332_v56 = vld [vmem:[#allocation4 + $0x100] sm:$0xff]  ;;  %v367_v16 = vld [vmem:[#allocation4 + $0x218] sm:$0xff]  ;;  %v1261_v18 = vpack.c.bf16 %v363_v15, %v360_v14  ;;  %v369_v21 = vld [vmem:[#allocation4 + $0x228] sm:$0xff] }
  0x65   :  { %1232 = vmatprep.subr.bf16.mxu0 %v1231_v61  ;;  %v389_v61 = vld [vmem:[#allocation4 + $0x2c8] sm:$0xff]  ;;  %v1369_v1 = vpack.c.bf16 %v335_v57, %v332_v56  ;;  %v376_v23 = vld [vmem:[#allocation4 + $0x260] sm:$0xff]  ;;  %v1265_v24 = vpack.c.bf16 %v369_v21, %v366_v20  ;;  %v375_v27 = vld [vmem:[#allocation4 + $0x258] sm:$0xff] }
  0x66   :  { %1358 = vmatpush3.bf16.msra.mxu1 %v1357_v28  ;;  %v1371_v3 = vpack.c.bf16 %v389_v61, %v386_v60  ;;  %v372_v26 = vld [vmem:[#allocation4 + $0x240] sm:$0xff]  ;;  %v379_v28 = vld [vmem:[#allocation4 + $0x278] sm:$0xff]  ;;  %v378_v32 = vld [vmem:[#allocation4 + $0x270] sm:$0xff]  ;;  %v1652_v60 = vshrl.u32 %v134_v59, 7 }
  0x67   :  { %1360 = vmatprep.subr.bf16.mxu1 %v1359_v31  ;;  %v1269_v30 = vpack.c.bf16 %v375_v27, %v372_v26  ;;  %v381_v33 = vld [vmem:[#allocation4 + $0x288] sm:$0xff]  ;;  %v388_v35 = vld [vmem:[#allocation4 + $0x2c0] sm:$0xff]  ;;  %v387_v39 = vld [vmem:[#allocation4 + $0x2b8] sm:$0xff] }
  0x68   :  { %1234 = vmatpush1.bf16.msra.mxu0 %v1233_v5  ;;  %v341_v5 = vld [vmem:[#allocation4 + $0x148] sm:$0xff]  ;;  %v1273_v36 = vpack.c.bf16 %v381_v33, %v378_v32  ;;  %v384_v38 = vld [vmem:[#allocation4 + $0x2a0] sm:$0xff]  ;;  %v394_v42 = vld [vmem:[#allocation4 + $0x2f0] sm:$0xff]  ;;  %v136_v61 = vsub.s32 0, %v1652_v60  ;;  %v140_v63 = vsub.s32 1, %v1652_v60  ;;  %v148_v26 = vsub.s32 3, %v1652_v60 }
  0x69   :  { %1236 = vmatprep.subr.bf16.mxu0 %v1235_v10  ;;  %v364_v10 = vld [vmem:[#allocation4 + $0x200] sm:$0xff]  ;;  %v1373_v11 = vpack.c.bf16 %v341_v5, %v338_v4  ;;  %v395_v45 = vld [vmem:[#allocation4 + $0x2f8] sm:$0xff]  ;;  %v393_v47 = vld [vmem:[#allocation4 + $0x2e8] sm:$0xff] }
  0x6a   :  { %1362 = vmatpush3.bf16.msra.mxu1 %v1361_v40  ;;  %v1259_v13 = vpack.c.bf16 %v364_v10, %v361_v9  ;;  %v1277_v40 = vpack.c.bf16 %v387_v39, %v384_v38  ;;  %v344_v50 = vld [vmem:[#allocation4 + $0x160] sm:$0xff]  ;;  %v347_v51 = vld [vmem:[#allocation4 + $0x178] sm:$0xff]  ;;  %v449_v57 = vld [vmem:[#allocation4 + $0x4a8] sm:$0xff] }
  0x6b   :  { %1364 = vmatprep.subr.bf16.mxu1 %v1363_v43  ;;  %v392_v43 = vld [vmem:[#allocation4 + $0x2e0] sm:$0xff]  ;;  %v399_v5 = vld [vmem:[#allocation4 + $0x318] sm:$0xff]  ;;  %v398_v8 = vld [vmem:[#allocation4 + $0x310] sm:$0xff] }
  0x6c   :  { %1238 = vmatpush1.bf16.msra.mxu0 %v1237_v17  ;;  %v370_v17 = vld [vmem:[#allocation4 + $0x230] sm:$0xff]  ;;  %v1375_v48 = vpack.c.bf16 %v395_v45, %v392_v43  ;;  %v400_v54 = vld [vmem:[#allocation4 + $0x320] sm:$0xff]  ;;  %v401_v9 = vld [vmem:[#allocation4 + $0x328] sm:$0xff] }
  0x6d   :  { %1240 = vmatprep.subr.bf16.mxu0 %v1239_v22  ;;  %v1263_v19 = vpack.c.bf16 %v370_v17, %v367_v16  ;;  %v373_v22 = vld [vmem:[#allocation4 + $0x248] sm:$0xff]  ;;  %v1658_v62 = vld [vmem:[%s1697_s2] sm:$0xf]  ;;  %v403_v10 = vld [vmem:[#allocation4 + $0x338] sm:$0xff]  ;;  %v1381_v17 = vpack.c.bf16 %v401_v9, %v398_v8 }
  0x6e   :  { %1366 = vmatpush3.bf16.msra.mxu1 %v1365_v52  ;;  %v1267_v25 = vpack.c.bf16 %v376_v23, %v373_v22  ;;  %v1377_v52 = vpack.c.bf16 %v347_v51, %v344_v50  ;;  %v396_v4 = vld [vmem:[#allocation4 + $0x300] sm:$0xff]  ;;  %v455_v14 = vld [vmem:[#allocation4 + $0x4d8] sm:$0xff]  ;;  %v149_v39 = vrot.slane %v1658_v62, %v148_v26  ;;  %v430_v9 = vld [vmem:[#allocation4 + $0x410] sm:$0xff] }
  0x6f   :  { %1368 = vmatprep.subr.bf16.mxu1 %v1367_v55  ;;  %v446_v55 = vld [vmem:[#allocation4 + $0x490] sm:$0xff]  ;;  %v1285_v16 = vpack.c.bf16 %v399_v5, %v396_v4  ;;  %v404_v23 = vld [vmem:[#allocation4 + $0x340] sm:$0xff]  ;;  %v411_v33 = vld [vmem:[#allocation4 + $0x378] sm:$0xff] }
  0x70   :  { %1242 = vmatpush1.bf16.msra.mxu0 %v1241_v29  ;;  %v382_v29 = vld [vmem:[#allocation4 + $0x290] sm:$0xff]  ;;  %v412_v27 = vld [vmem:[#allocation4 + $0x380] sm:$0xff]  ;;  %v415_v38 = vld [vmem:[#allocation4 + $0x398] sm:$0xff] }
  0x71   :  { %1244 = vmatprep.subr.bf16.mxu0 %v1243_v34  ;;  %v1271_v31 = vpack.c.bf16 %v382_v29, %v379_v28  ;;  %v385_v34 = vld [vmem:[#allocation4 + $0x2a8] sm:$0xff]  ;;  %v458_v28 = vld [vmem:[#allocation4 + $0x4f0] sm:$0xff]  ;;  %v408_v32 = vld [vmem:[#allocation4 + $0x360] sm:$0xff] }
  0x72   :  { %1370 = vmatpush3.bf16.msra.mxu1 %v1369_v1  ;;  %v1275_v37 = vpack.c.bf16 %v388_v35, %v385_v34  ;;  %v137_v1 = vrot.slane %v1658_v62, %v136_v61  ;;  %v461_v29 = vld [vmem:[#allocation4 + $0x508] sm:$0xff]  ;;  %v416_v51 = vld [vmem:[#allocation4 + $0x3a0] sm:$0xff]  ;;  %v427_v8 = vld [vmem:[#allocation4 + $0x3f8] sm:$0xff] }
  0x73   :  { %1372 = vmatprep.subr.bf16.mxu1 %v1371_v3  ;;  %v1387_v35 = vpack.c.bf16 %v461_v29, %v458_v28  ;;  %v435_v28 = vld [vmem:[#allocation4 + $0x438] sm:$0xff] }
  0x74   :  { %1246 = vmatpush1.bf16.msra.mxu0 %v1245_v41  ;;  %v391_v41 = vld [vmem:[#allocation4 + $0x2d8] sm:$0xff] }
  0x75   :  { %1248 = vmatprep.subr.bf16.mxu0 %v1247_v46  ;;  %v1279_v44 = vpack.c.bf16 %v394_v42, %v391_v41  ;;  %v390_v46 = vld [vmem:[#allocation4 + $0x2d0] sm:$0xff]  ;;  %v464_v41 = vld [vmem:[#allocation4 + $0x520] sm:$0xff]  ;;  %v467_v42 = vld [vmem:[#allocation4 + $0x538] sm:$0xff] }
  0x76   :  { %1374 = vmatpush3.bf16.msra.mxu1 %v1373_v11  ;;  %v1281_v49 = vpack.c.bf16 %v393_v47, %v390_v46  ;;  %v414_v46 = vld [vmem:[#allocation4 + $0x390] sm:$0xff]  ;;  %v417_v47 = vld [vmem:[#allocation4 + $0x3a8] sm:$0xff]  ;;  %v1391_v50 = vpack.c.bf16 %v467_v42, %v464_v41 }
  0x77   :  { %1376 = vmatprep.subr.bf16.mxu1 %v1375_v48  ;;  %v1297_v59 = vpack.c.bf16 %v417_v47, %v414_v46  ;;  %v443_v46 = vld [vmem:[#allocation4 + $0x478] sm:$0xff]  ;;  %v445_v47 = vld [vmem:[#allocation4 + $0x488] sm:$0xff] }
  0x78   :  { %1250 = vmatpush1.bf16.msra.mxu0 %v1249_v53  ;;  %v397_v53 = vld [vmem:[#allocation4 + $0x308] sm:$0xff] }
  0x79   :  { %1252 = vmatprep.subr.bf16.mxu0 %v1251_v58  ;;  %v1283_v56 = vpack.c.bf16 %v400_v54, %v397_v53  ;;  %v1379_v58 = vpack.c.bf16 %v449_v57, %v446_v55  ;;  %v421_v53 = vld [vmem:[#allocation4 + $0x3c8] sm:$0xff]  ;;  %v424_v55 = vld [vmem:[#allocation4 + $0x3e0] sm:$0xff] }
  0x7a   :  { %1378 = vmatpush3.bf16.msra.mxu1 %v1377_v52  ;;  %v419_v52 = vld [vmem:[#allocation4 + $0x3b8] sm:$0xff]  ;;  %v473_v57 = vld [vmem:[#allocation4 + $0x568] sm:$0xff]  ;;  %v1299_v4 = vpack.c.bf16 %v424_v55, %v421_v53  ;;  %v454_v55 = vld [vmem:[#allocation4 + $0x4d0] sm:$0xff] }
  0x7b   :  { %1380 = vmatprep.subr.bf16.mxu1 %v1379_v58  ;;  %v447_v53 = vld [vmem:[#allocation4 + $0x498] sm:$0xff] }
  0x7c   :  { %1254 = vmatpush1.bf16.msra.mxu0 %v1253_v2  ;;  %v141_v2 = vrot.slane %v1658_v62, %v140_v63 }
  0x7d   :  { %1256 = vmatprep.subr.bf16.mxu0 %v1255_v6 }
  0x80   :  { %1258 = vmatpush1.bf16.msra.mxu0 %v1257_v12  ;;  %v406_v12 = vld [vmem:[#allocation4 + $0x350] sm:$0xff] }
  0x81   :  { %1260 = vmatprep.subr.bf16.mxu0 %v1259_v13  ;;  %v452_v13 = vld [vmem:[#allocation4 + $0x4c0] sm:$0xff]  ;;  %v1287_v21 = vpack.c.bf16 %v406_v12, %v403_v10 }
  0x82   :  { %v1383_v22 = vpack.c.bf16 %v455_v14, %v452_v13  ;;  %v476_v10 = vld [vmem:[#allocation4 + $0x580] sm:$0xff]  ;;  %v426_v14 = vld [vmem:[#allocation4 + $0x3f0] sm:$0xff] }
  0x84   :  { %1262 = vmatpush1.bf16.msra.mxu0 %v1261_v18  ;;  %v402_v18 = vld [vmem:[#allocation4 + $0x330] sm:$0xff] }
  0x85   :  { %1264 = vmatprep.subr.bf16.mxu0 %v1263_v19  ;;  %v405_v19 = vld [vmem:[#allocation4 + $0x348] sm:$0xff] }
  0x88   :  { %1266 = vmatpush1.bf16.msra.mxu0 %v1265_v24  ;;  %v407_v24 = vld [vmem:[#allocation4 + $0x358] sm:$0xff] }
  0x89   :  { %1268 = vmatprep.subr.bf16.mxu0 %v1267_v25  ;;  %v409_v25 = vld [vmem:[#allocation4 + $0x368] sm:$0xff] }
  0x8a   :  { %v1291_v34 = vpack.c.bf16 %v412_v27, %v409_v25  ;;  %v432_v27 = vld [vmem:[#allocation4 + $0x420] sm:$0xff] }
  0x8c   :  { %1270 = vmatpush1.bf16.msra.mxu0 %v1269_v30  ;;  %v1289_v30 = vpack.c.bf16 %v405_v19, %v402_v18  ;;  %v428_v18 = vld [vmem:[#allocation4 + $0x400] sm:$0xff]  ;;  %v431_v19 = vld [vmem:[#allocation4 + $0x418] sm:$0xff] }
  0x8d   :  { %1272 = vmatprep.subr.bf16.mxu0 %v1271_v31  ;;  %v1385_v31 = vpack.c.bf16 %v407_v24, %v404_v23  ;;  %v485_v23 = vld [vmem:[#allocation4 + $0x5c8] sm:$0xff]  ;;  %v144_v24 = vsub.s32 2, %v1652_v60  ;;  %v1401_v26 = vpack.c.bf16 %v431_v19, %v428_v18  ;;  %v471_v18 = vld [vmem:[#allocation4 + $0x558] sm:$0xff]  ;;  %v830_v60 = vld [vmem:[#allocation6 + $0x120] sm:$0xff] }
  0x8e   :  { %v475_v19 = vld [vmem:[#allocation4 + $0x578] sm:$0xff] }
  0x90   :  { %1274 = vmatpush1.bf16.msra.mxu0 %v1273_v36  ;;  %v410_v36 = vld [vmem:[#allocation4 + $0x370] sm:$0xff] }
  0x91   :  { %1276 = vmatprep.subr.bf16.mxu0 %v1275_v37  ;;  %v413_v37 = vld [vmem:[#allocation4 + $0x388] sm:$0xff] }
  0x92   :  { %v1389_v45 = vpack.c.bf16 %v413_v37, %v410_v36  ;;  %v491_v36 = vld [vmem:[#allocation4 + $0x5f8] sm:$0xff]  ;;  %v145_v37 = vrot.slane %v1658_v62, %v144_v24 }
  0x94   :  { %1278 = vmatpush1.bf16.msra.mxu0 %v1277_v40  ;;  %v418_v40 = vld [vmem:[#allocation4 + $0x3b0] sm:$0xff] }
  0x95   :  { %1280 = vmatprep.subr.bf16.mxu0 %v1279_v44  ;;  %v1293_v44 = vpack.c.bf16 %v411_v33, %v408_v32  ;;  %v437_v32 = vld [vmem:[#allocation4 + $0x448] sm:$0xff]  ;;  %v439_v33 = vld [vmem:[#allocation4 + $0x458] sm:$0xff] }
  0x98   :  { %1282 = vmatpush1.bf16.msra.mxu0 %v1281_v49  ;;  %v1295_v49 = vpack.c.bf16 %v418_v40, %v415_v38  ;;  %v1309_v38 = vpack.c.bf16 %v435_v28, %v432_v27  ;;  %v438_v40 = vld [vmem:[#allocation4 + $0x450] sm:$0xff]  ;;  %v484_v27 = vld [vmem:[#allocation4 + $0x5c0] sm:$0xff] }
  0x99   :  { %1284 = vmatprep.subr.bf16.mxu0 %v1283_v56  ;;  %v470_v56 = vld [vmem:[#allocation4 + $0x550] sm:$0xff] }
  0x9a   :  { %v1395_v5 = vpack.c.bf16 %v473_v57, %v470_v56 }
 0x12e   :  { %v220_v3 = vpop.f32.mrb[0].mxu0 }
 0x12f   :  { %v221_v6 = vadd.f32 %v220_v3, %v137_v1  ;;  %v222_v7 = vpop.f32.mrb[1].mxu0  ;;  %v1393_v1 = vpack.c.bf16 %v419_v52, %v416_v51  ;;  %v423_v3 = vld [vmem:[#allocation4 + $0x3d8] sm:$0xff]  ;;  %v444_v52 = vld [vmem:[#allocation4 + $0x480] sm:$0xff] }
 0x130   :  { %v223_v11 = vadd.f32 %v222_v7, %v141_v2  ;;  %v1669_v43 = vpop.f32.mrb[0].mxu1  ;;  %v420_v2 = vld [vmem:[#allocation4 + $0x3c0] sm:$0xff]  ;;  %v425_v7 = vld [vmem:[#allocation4 + $0x3e8] sm:$0xff]  ;;  %v1317_v57 = vpack.c.bf16 %v447_v53, %v444_v52 }
 0x131   :  { %v296_v20 = vmax.f32 %v221_v6, 0.0  ;;  %v293_v48 = vpop.f32.mrb[1].mxu1  ;;  %v422_v6 = vld [vmem:[#allocation4 + $0x3d0] sm:$0xff]  ;;  %v1301_v12 = vpack.c.bf16 %v423_v3, %v420_v2  ;;  %v460_v2 = vld [vmem:[#allocation4 + $0x500] sm:$0xff] }
 0x132   :  { %v297_v15 = vmax.f32 %v223_v11, 0.0  ;;  %v294_v54 = vadd.f32 %v293_v48, %v149_v39  ;;  %v479_v11 = vld [vmem:[#allocation4 + $0x598] sm:$0xff]  ;;  %v1397_v13 = vpack.c.bf16 %v425_v7, %v422_v6  ;;  %v448_v48 = vld [vmem:[#allocation4 + $0x4a0] sm:$0xff] }
 0x133   :  { %v1315_v51 = vpack.c.bf16 %v448_v48, %v445_v47  ;;  %v459_v6 = vld [vmem:[#allocation4 + $0x4f8] sm:$0xff]  ;;  %v796_v48 = vld [vmem:[#allocation6 + $0x10] sm:$0xff] }
 0x134   :  { %573 = vmatprep.mubr.f32.mxu0 %v297_v15  ;;  %715 = vmatprep.mubr.f32.mxu1 %v297_v15  ;;  %v299_v58 = vmax.f32 %v294_v54, 0.0  ;;  %v429_v15 = vld [vmem:[#allocation4 + $0x408] sm:$0xff]  ;;  %v451_v54 = vld [vmem:[#allocation4 + $0x4b8] sm:$0xff] }
 0x135   :  { %574 = vmatmul.mubr.f32.vlgmr.msra.gmra.mrb[2].mxu0 %v296_v20  ;;  %716 = vmatmul.mubr.f32.vlgmr.msra.gmra.mrb[2].mxu1 %v296_v20  ;;  %v433_v20 = vld [vmem:[#allocation4 + $0x428] sm:$0xff]  ;;  %v1305_v25 = vpack.c.bf16 %v429_v15, %v426_v14  ;;  %v463_v7 = vld [vmem:[#allocation4 + $0x518] sm:$0xff]  ;;  %v472_v14 = vld [vmem:[#allocation4 + $0x560] sm:$0xff] }
 0x136   :  { %1286 = vmatpush1.bf16.msra.mxu0 %v1285_v16  ;;  %1382 = vmatpush3.bf16.msra.mxu1 %v1381_v17  ;;  %v1303_v16 = vpack.c.bf16 %v430_v9, %v427_v8  ;;  %v1399_v17 = vpack.c.bf16 %v479_v11, %v476_v10  ;;  %v466_v8 = vld [vmem:[#allocation4 + $0x530] sm:$0xff]  ;;  %v813_v47 = vld [vmem:[#allocation6 + $0x98] sm:$0xff] }
 0x137   :  { %1288 = vmatprep.subr.bf16.mxu0 %v1287_v21  ;;  %1384 = vmatprep.subr.bf16.mxu1 %v1383_v22  ;;  %v436_v21 = vld [vmem:[#allocation4 + $0x440] sm:$0xff]  ;;  %v482_v22 = vld [vmem:[#allocation4 + $0x5b0] sm:$0xff]  ;;  %v1327_v10 = vpack.c.bf16 %v466_v8, %v463_v7  ;;  %v803_v7 = vld [vmem:[#allocation6 + $0x48] sm:$0xff] }
 0x138   :  { %785 = vmatprep.mubr.f32.mxu1 %v299_v58  ;;  %644 = vmatprep.mubr.f32.mxu0 %v299_v58  ;;  %v1307_v29 = vpack.c.bf16 %v436_v21, %v433_v20  ;;  %v1319_v58 = vpack.c.bf16 %v454_v55, %v451_v54  ;;  %v462_v11 = vld [vmem:[#allocation4 + $0x510] sm:$0xff]  ;;  %v798_v54 = vld [vmem:[#allocation6 + $0x20] sm:$0xff]  ;;  %v799_v55 = vld [vmem:[#allocation6 + $0x28] sm:$0xff] }
 0x139   :  { %v478_v20 = vld [vmem:[#allocation4 + $0x590] sm:$0xff] }
 0x13a   :  { %1290 = vmatpush1.bf16.msra.mxu0 %v1289_v30  ;;  %1386 = vmatpush3.bf16.msra.mxu1 %v1385_v31  ;;  %v1403_v30 = vpack.c.bf16 %v485_v23, %v482_v22  ;;  %v434_v31 = vld [vmem:[#allocation4 + $0x430] sm:$0xff]  ;;  %v1335_v22 = vpack.c.bf16 %v478_v20, %v475_v19  ;;  %v807_v19 = vld [vmem:[#allocation6 + $0x68] sm:$0xff] }
 0x13b   :  { %1292 = vmatprep.subr.bf16.mxu0 %v1291_v34  ;;  %1388 = vmatprep.subr.bf16.mxu1 %v1387_v35  ;;  %v442_v34 = vld [vmem:[#allocation4 + $0x470] sm:$0xff]  ;;  %v488_v35 = vld [vmem:[#allocation4 + $0x5e0] sm:$0xff]  ;;  %v1405_v39 = vpack.c.bf16 %v437_v32, %v434_v31  ;;  %v483_v31 = vld [vmem:[#allocation4 + $0x5b8] sm:$0xff] }
 0x13c   :  { %v1311_v41 = vpack.c.bf16 %v442_v34, %v439_v33  ;;  %v1407_v42 = vpack.c.bf16 %v491_v36, %v488_v35  ;;  %v474_v23 = vld [vmem:[#allocation4 + $0x570] sm:$0xff]  ;;  %v487_v32 = vld [vmem:[#allocation4 + $0x5d8] sm:$0xff] }
 0x13d   :  { %v490_v33 = vld [vmem:[#allocation4 + $0x5f0] sm:$0xff] }
 0x13e   :  { %1294 = vmatpush1.bf16.msra.mxu0 %v1293_v44  ;;  %1390 = vmatpush3.bf16.msra.mxu1 %v1389_v45  ;;  %v441_v44 = vld [vmem:[#allocation4 + $0x468] sm:$0xff]  ;;  %v440_v45 = vld [vmem:[#allocation4 + $0x460] sm:$0xff]  ;;  %v1343_v35 = vpack.c.bf16 %v490_v33, %v487_v32  ;;  %v486_v36 = vld [vmem:[#allocation4 + $0x5d0] sm:$0xff] }
 0x13f   :  { %1296 = vmatprep.subr.bf16.mxu0 %v1295_v49  ;;  %1392 = vmatprep.subr.bf16.mxu1 %v1391_v50  ;;  %v1676_v49 = vadd.f32 %v1669_v43, %v145_v37  ;;  %v1313_v62 = vpack.c.bf16 %v441_v44, %v438_v40  ;;  %v1409_v50 = vpack.c.bf16 %v443_v46, %v440_v45  ;;  %v450_v43 = vld [vmem:[#allocation4 + $0x4b0] sm:$0xff]  ;;  %v489_v37 = vld [vmem:[#allocation4 + $0x5e8] sm:$0xff]  ;;  %v492_v32 = vld [vmem:[%s1699_s4] sm:$0x7] }
 0x140   :  { %v811_v40 = vld [vmem:[#allocation6 + $0x88] sm:$0xff]  ;;  %v812_v46 = vld [vmem:[#allocation6 + $0x90] sm:$0xff]  ;;  %v505_v33 = vrot.slane %v492_v32, %v144_v24 }
 0x141   :  { %v298_v56 = vmax.f32 %v1676_v49, 0.0  ;;  %v795_v44 = vld [vmem:[#allocation6 + $0x8] sm:$0xff]  ;;  %v1415_v49 = vpack.c.bf16 %v813_v47, %v812_v46  ;;  %v820_v8 = vld [vmem:[#allocation6 + $0xd0] sm:$0xff] }
 0x142   :  { %1298 = vmatpush1.bf16.msra.mxu0 %v1297_v59  ;;  %1394 = vmatpush3.bf16.msra.mxu1 %v1393_v1  ;;  %v453_v59 = vld [vmem:[#allocation4 + $0x4c8] sm:$0xff] }
 0x143   :  { %1300 = vmatprep.subr.bf16.mxu0 %v1299_v4  ;;  %1396 = vmatprep.subr.bf16.mxu1 %v1395_v5  ;;  %v457_v1 = vld [vmem:[#allocation4 + $0x4e8] sm:$0xff]  ;;  %v1321_v3 = vpack.c.bf16 %v453_v59, %v450_v43  ;;  %v456_v5 = vld [vmem:[#allocation4 + $0x4e0] sm:$0xff]  ;;  %v800_v59 = vld [vmem:[#allocation6 + $0x30] sm:$0xff] }
 0x144   :  { %v1323_v4 = vpack.c.bf16 %v460_v2, %v457_v1  ;;  %v1325_v9 = vpack.c.bf16 %v459_v6, %v456_v5  ;;  %v801_v1 = vld [vmem:[#allocation6 + $0x38] sm:$0xff]  ;;  %v818_v2 = vld [vmem:[#allocation6 + $0xc0] sm:$0xff]  ;;  %v827_v46 = vld [vmem:[#allocation6 + $0x108] sm:$0xff] }
 0x145   :  { %v802_v6 = vld [vmem:[#allocation6 + $0x40] sm:$0xff] }
 0x146   :  { %1302 = vmatpush1.bf16.msra.mxu0 %v1301_v12  ;;  %1398 = vmatpush3.bf16.msra.mxu1 %v1397_v13  ;;  %v465_v12 = vld [vmem:[#allocation4 + $0x528] sm:$0xff] }
 0x147   :  { %1304 = vmatprep.subr.bf16.mxu0 %v1303_v16  ;;  %1400 = vmatprep.subr.bf16.mxu1 %v1399_v17  ;;  %v469_v13 = vld [vmem:[#allocation4 + $0x548] sm:$0xff]  ;;  %v1329_v15 = vpack.c.bf16 %v465_v12, %v462_v11  ;;  %v468_v17 = vld [vmem:[#allocation4 + $0x540] sm:$0xff]  ;;  %v804_v12 = vld [vmem:[#allocation6 + $0x50] sm:$0xff] }
 0x148   :  { %v1331_v16 = vpack.c.bf16 %v472_v14, %v469_v13  ;;  %v1333_v21 = vpack.c.bf16 %v471_v18, %v468_v17  ;;  %v805_v13 = vld [vmem:[#allocation6 + $0x58] sm:$0xff]  ;;  %v822_v14 = vld [vmem:[#allocation6 + $0xe0] sm:$0xff] }
 0x149   :  { %v806_v18 = vld [vmem:[#allocation6 + $0x60] sm:$0xff] }
 0x14a   :  { %1306 = vmatpush1.bf16.msra.mxu0 %v1305_v25  ;;  %1402 = vmatpush3.bf16.msra.mxu1 %v1401_v26  ;;  %v477_v25 = vld [vmem:[#allocation4 + $0x588] sm:$0xff]  ;;  %v1437_v20 = vpack.c.bf16 %v807_v19, %v806_v18 }
 0x14b   :  { %1308 = vmatprep.subr.bf16.mxu0 %v1307_v29  ;;  %1404 = vmatprep.subr.bf16.mxu1 %v1403_v30  ;;  %v481_v26 = vld [vmem:[#allocation4 + $0x5a8] sm:$0xff]  ;;  %v1337_v28 = vpack.c.bf16 %v477_v25, %v474_v23  ;;  %v480_v30 = vld [vmem:[#allocation4 + $0x5a0] sm:$0xff]  ;;  %v808_v25 = vld [vmem:[#allocation6 + $0x70] sm:$0xff] }
 0x14c   :  { %v1339_v29 = vpack.c.bf16 %v484_v27, %v481_v26  ;;  %v1341_v34 = vpack.c.bf16 %v483_v31, %v480_v30  ;;  %v809_v26 = vld [vmem:[#allocation6 + $0x78] sm:$0xff] }
 0x14d   :  { %v1441_v27 = vpack.c.bf16 %v809_v26, %v808_v25 }
 0x14e   :  { %1310 = vmatpush1.bf16.msra.mxu0 %v1309_v38  ;;  %1406 = vmatpush3.bf16.msra.mxu1 %v1405_v39  ;;  %v1345_v38 = vpack.c.bf16 %v489_v37, %v486_v36  ;;  %v810_v39 = vld [vmem:[#allocation6 + $0x80] sm:$0xff] }
 0x14f   :  { %1312 = vmatprep.subr.bf16.mxu0 %v1311_v41  ;;  %1408 = vmatprep.subr.bf16.mxu1 %v1407_v42  ;;  %v1411_v41 = vpack.c.bf16 %v811_v40, %v810_v39  ;;  %v794_v42 = vld [vmem:[#allocation6] sm:$0xff]  ;;  %v497_v39 = vrot.slane %v492_v32, %v136_v61  ;;  %v501_v40 = vrot.slane %v492_v32, %v140_v63  ;;  %v831_v61 = vld [vmem:[#allocation6 + $0x128] sm:$0xff] }
 0x150   :  { %v1413_v45 = vpack.c.bf16 %v795_v44, %v794_v42  ;;  %v1450_v63 = vpack.c.bf16 %v831_v61, %v830_v60 }
 0x152   :  { %1314 = vmatpush1.bf16.msra.mxu0 %v1313_v62  ;;  %1410 = vmatpush3.bf16.msra.mxu1 %v1409_v50  ;;  %v797_v62 = vld [vmem:[#allocation6 + $0x18] sm:$0xff]  ;;  %v814_v50 = vld [vmem:[#allocation6 + $0xa0] sm:$0xff] }
 0x153   :  { %1316 = vmatprep.subr.bf16.mxu0 %v1315_v51  ;;  %1412 = vmatprep.subr.bf16.mxu1 %v1411_v41  ;;  %v815_v51 = vld [vmem:[#allocation6 + $0xa8] sm:$0xff]  ;;  %v1417_v52 = vpack.c.bf16 %v797_v62, %v796_v48  ;;  %v828_v62 = vld [vmem:[#allocation6 + $0x110] sm:$0xff] }
 0x154   :  { %v1419_v53 = vpack.c.bf16 %v815_v51, %v814_v50  ;;  %v829_v50 = vld [vmem:[#allocation6 + $0x118] sm:$0xff] }
 0x155   :  { %786 = vmatmul.mubr.f32.vlgmr.msra.gmra.mrb[4].mxu1 %v298_v56  ;;  %v1447_v51 = vpack.c.bf16 %v829_v50, %v828_v62 }
 0x156   :  { %1318 = vmatpush1.bf16.msra.mxu0 %v1317_v57  ;;  %1414 = vmatpush3.bf16.msra.mxu1 %v1413_v45  ;;  %v817_v57 = vld [vmem:[#allocation6 + $0xb8] sm:$0xff]  ;;  %v826_v45 = vld [vmem:[#allocation6 + $0x100] sm:$0xff] }
 0x157   :  { %1320 = vmatprep.subr.bf16.mxu0 %v1319_v58  ;;  %1416 = vmatprep.subr.bf16.mxu1 %v1415_v49  ;;  %v1421_v58 = vpack.c.bf16 %v799_v55, %v798_v54  ;;  %v1444_v49 = vpack.c.bf16 %v827_v46, %v826_v45  ;;  %v834_v55 = vld [vmem:[#allocation6 + $0x140] sm:$0xff] }
 0x15a   :  { %1322 = vmatpush1.bf16.msra.mxu0 %v1321_v3  ;;  %1418 = vmatpush3.bf16.msra.mxu1 %v1417_v52  ;;  %v819_v3 = vld [vmem:[#allocation6 + $0xc8] sm:$0xff]  ;;  %v832_v52 = vld [vmem:[#allocation6 + $0x130] sm:$0xff] }
 0x15b   :  { %1324 = vmatprep.subr.bf16.mxu0 %v1323_v4  ;;  %1420 = vmatprep.subr.bf16.mxu1 %v1419_v53  ;;  %v1425_v4 = vpack.c.bf16 %v801_v1, %v800_v59  ;;  %v1427_v5 = vpack.c.bf16 %v819_v3, %v818_v2  ;;  %v833_v53 = vld [vmem:[#allocation6 + $0x138] sm:$0xff]  ;;  %v838_v59 = vld [vmem:[#allocation6 + $0x160] sm:$0xff]  ;;  %v839_v1 = vld [vmem:[#allocation6 + $0x168] sm:$0xff] }
 0x15c   :  { %v1453_v54 = vpack.c.bf16 %v833_v53, %v832_v52  ;;  %v1462_v2 = vpack.c.bf16 %v839_v1, %v838_v59  ;;  %v840_v3 = vld [vmem:[#allocation6 + $0x170] sm:$0xff] }
 0x15e   :  { %1326 = vmatpush1.bf16.msra.mxu0 %v1325_v9  ;;  %1422 = vmatpush3.bf16.msra.mxu1 %v1421_v58  ;;  %v821_v9 = vld [vmem:[#allocation6 + $0xd8] sm:$0xff]  ;;  %v836_v58 = vld [vmem:[#allocation6 + $0x150] sm:$0xff] }
 0x15f   :  { %1328 = vmatprep.subr.bf16.mxu0 %v1327_v10  ;;  %v1429_v10 = vpack.c.bf16 %v803_v7, %v802_v6  ;;  %v1431_v11 = vpack.c.bf16 %v821_v9, %v820_v8 }
 0x162   :  { %1330 = vmatpush1.bf16.msra.mxu0 %v1329_v15  ;;  %v823_v15 = vld [vmem:[#allocation6 + $0xe8] sm:$0xff] }
 0x163   :  { %1332 = vmatprep.subr.bf16.mxu0 %v1331_v16  ;;  %v1433_v16 = vpack.c.bf16 %v805_v13, %v804_v12  ;;  %v1435_v17 = vpack.c.bf16 %v823_v15, %v822_v14 }
 0x166   :  { %1334 = vmatpush1.bf16.msra.mxu0 %v1333_v21  ;;  %v824_v21 = vld [vmem:[#allocation6 + $0xf0] sm:$0xff] }
 0x167   :  { %1336 = vmatprep.subr.bf16.mxu0 %v1335_v22  ;;  %v825_v22 = vld [vmem:[#allocation6 + $0xf8] sm:$0xff] }
 0x168   :  { %v1439_v23 = vpack.c.bf16 %v825_v22, %v824_v21 }
 0x16a   :  { %1338 = vmatpush1.bf16.msra.mxu0 %v1337_v28  ;;  %v1565_v28 = vmov 0.0|0.0  }
 0x16b   :  { %1340 = vmatprep.subr.bf16.mxu0 %v1339_v29 }
 0x16e   :  { %1342 = vmatpush1.bf16.msra.mxu0 %v1341_v34 }
 0x16f   :  { %1344 = vmatprep.subr.bf16.mxu0 %v1343_v35 }
 0x172   :  { %1346 = vmatpush1.bf16.msra.mxu0 %v1345_v38 }
 0x175   :  { %645 = vmatmul.mubr.f32.vlgmr.msra.gmra.mrb[2].mxu0 %v298_v56  ;;  %v816_v56 = vld [vmem:[#allocation6 + $0xb0] sm:$0xff] }
 0x176   :  { %v1423_v43 = vpack.c.bf16 %v817_v57, %v816_v56  ;;  %v835_v56 = vld [vmem:[#allocation6 + $0x148] sm:$0xff] }
 0x177   :  { %v1456_v57 = vpack.c.bf16 %v835_v56, %v834_v55 }
 0x178   :  { %1424 = vmatprep.subr.bf16.mxu1 %v1423_v43  ;;  %v837_v43 = vld [vmem:[#allocation6 + $0x158] sm:$0xff] }
 0x179   :  { %1426 = vmatpush3.bf16.msra.mxu1 %v1425_v4  ;;  %v841_v4 = vld [vmem:[#allocation6 + $0x178] sm:$0xff] }
 0x17a   :  { %1428 = vmatprep.subr.bf16.mxu1 %v1427_v5  ;;  %v1465_v5 = vpack.c.bf16 %v841_v4, %v840_v3 }
 0x17d   :  { %1430 = vmatpush3.bf16.msra.mxu1 %v1429_v10  ;;  %v997_v10 = vld [vmem:[%s1701_s6] ss:$0 sm:$0xff] }
 0x17e   :  { %1432 = vmatprep.subr.bf16.mxu1 %v1431_v11 }
 0x181   :  { %1434 = vmatpush3.bf16.msra.mxu1 %v1433_v16 }
 0x182   :  { %1436 = vmatprep.subr.bf16.mxu1 %v1435_v17 }
 0x185   :  { %1438 = vmatpush3.bf16.msra.mxu1 %v1437_v20 }
 0x186   :  { %1440 = vmatprep.subr.bf16.mxu1 %v1439_v23 }
 0x189   :  { %1442 = vmatpush3.bf16.msra.mxu1 %v1441_v27 }
 0x18a   :  { %1443 = vmatprep.subr.bf16.mxu1 %v1565_v28 }
 0x208   :  { %v1030_v29 = vpop.f32.mrb[2].mxu1 }
 0x209   :  { %v1031_v30 = vpop.f32.mrb[3].mxu1 }
 0x20a   :  { %v1032_v31 = vadd.f32 %v1031_v30, %v1030_v29 }
 0x20c   :  { %v718_v36 = vadd.f32 %v1032_v31, %v505_v33 }
 0x228   :  { %v1065_v34 = vpop.f32.mrb[4].mxu1 }
 0x229   :  { %v1066_v35 = vpop.f32.mrb[5].mxu1 }
 0x22a   :  { %v1067_v37 = vadd.f32 %v1066_v35, %v1065_v34 }
 0x22c   :  { %v788_v38 = vadd.f32 %v1067_v37, %v718_v36 }
 0x22e   :  { %v793_v6 = vmax.f32 %v788_v38, 0.0 }
 0x248   :  { %v646_v41 = vpop.f32.mrb[2].mxu0 }
 0x249   :  { %v1467_v42 = vadd.f32 %v646_v41, %v497_v39  ;;  %v648_v44 = vpop.f32.mrb[3].mxu0 }
 0x24a   :  { %v1468_v47 = vadd.f32 %v648_v44, %v501_v40 }
 0x24b   :  { %v791_v24 = vmax.f32 %v1467_v42, 0.0 }
 0x24c   :  { %v792_v48 = vmax.f32 %v1468_v47, 0.0 }
 0x24e   :  { %913 = vmatprep.mubr.f32.mxu1 %v792_v48 }
 0x24f   :  { %914 = vmatmul.mubr.f32.vlgmr.msra.gmra.mrb[6].mxu1 %v791_v24 }
 0x250   :  { %1445 = vmatpush3.bf16.msra.mxu1 %v1444_v49  ;;  %1152 = vmatprep.mubr.msk.f32.mxu1 %vm1566_vm0, %v1564_v0  ;;  %v1459_v0 = vpack.c.bf16 %v837_v43, %v836_v58 }
 0x251   :  { %1446 = vmatprep.subr.bf16.mxu1 %v1565_v28 }
 0x254   :  { %1448 = vmatpush3.bf16.msra.mxu1 %v1447_v51 }
 0x255   :  { %1449 = vmatprep.subr.bf16.mxu1 %v1565_v28 }
 0x258   :  { %1451 = vmatpush3.bf16.msra.mxu1 %v1450_v63 }
 0x259   :  { %1452 = vmatprep.subr.bf16.mxu1 %v1565_v28 }
 0x25c   :  { %1454 = vmatpush3.bf16.msra.mxu1 %v1453_v54 }
 0x25d   :  { %1455 = vmatprep.subr.bf16.mxu1 %v1565_v28 }
 0x260   :  { %1457 = vmatpush3.bf16.msra.mxu1 %v1456_v57 }
 0x261   :  { %1458 = vmatprep.subr.bf16.mxu1 %v1565_v28 }
 0x264   :  { %1460 = vmatpush3.bf16.msra.mxu1 %v1459_v0 }
 0x265   :  { %1461 = vmatprep.subr.bf16.mxu1 %v1565_v28 }
 0x268   :  { %1463 = vmatpush3.bf16.msra.mxu1 %v1462_v2 }
 0x269   :  { %1464 = vmatprep.subr.bf16.mxu1 %v1565_v28 }
 0x26c   :  { %1466 = vmatpush3.bf16.msra.mxu1 %v1465_v5 }
 0x26f   :  { %1153 = vmatmul.mubr.f32.vlgmr.msra.gmra.mrb[8].mxu1 %v793_v6 }
 0x322   :  { %v1100_v7 = vpop.f32.mrb[6].mxu1 }
 0x323   :  { %v1101_v8 = vpop.f32.mrb[7].mxu1 }
 0x324   :  { %v1102_v9 = vadd.f32 %v1101_v8, %v1100_v7 }
 0x326   :  { %v916_v11 = vadd.f32 %v1102_v9, %v997_v10 }
 0x342   :  { %v985_v12 = vpop.f32.mrb[8].mxu1 }
 0x343   :  { %v986_v13 = vadd.f32 %v985_v12, %v916_v11  ;;  %v1154_v14 = vpop.f32.mrb[9].mxu1 }
 0x345   :  { %1483 = vtanh.f32 %v986_v13 }
 0x34f   :  { %v1484_v15 = vpop.eup %1483 }
 0x350   :  { %990 = vst [vmem:[%s1702_s7] sm:$0xff] %v1484_v15 }
 0x351   :  { %995 = vsyncpa [#allocation3], 1 }
 0x352   :  { %996 = vsyncpa [#allocation5], 1 }

</bundles_post_ra>
